<compile_context>
chip_gen: v7x
topology: tpu7x:2x2x1
jax: 0.10.0
libtpu: 0.0.40
codegen_flags: <defaults>
</compile_context>

<pallas_src>
import numpy as np
import jax
import jax.numpy as jnp
from jax.experimental import pallas as pl
from jax.experimental.pallas import tpu as pltpu


def _fused_conv_chain_kernel(x_ref, p_ref, corr_ref, other_ref, o_ref):
    """Three fused 1x1 convs on a lane-dense (C, Mp) slab.

    x_ref    : (3, Mp)  input, zero-padded spatially by 3 and flattened (M on lanes)
    p_ref    : (8, 32)  packed weights/biases (w1|b1|w2|b2|w3|b3), VMEM resident
    corr_ref : (2, Mp)  precomputed border-ring correction (accounts for the
                        inter-stage zero padding of conv2 / conv3)
    other    : (1, 1)   trailing scalar add, in SMEM
    o_ref    : (2, Mp)
    """
    p = p_ref[...]
    w1, b1 = p[0:7, 0:3],   p[0:7, 3:4]
    w2, b2 = p[0:8, 4:11],  p[0:8, 11:12]
    w3, b3 = p[0:2, 12:20], p[0:2, 20:21]

    def pw(x, w, b):
        # pointwise conv as Cin VPU broadcast-FMAs:
        #   out[c, :] = b[c] + sum_k w[c, k] * x[k, :]
        cout, cin = w.shape
        acc = jnp.broadcast_to(b, (cout, x.shape[1]))
        for k in range(cin):                      # tiny static loop, unrolled
            acc = acc + w[:, k:k + 1] * x[k:k + 1, :]
        return acc

    x = x_ref[...]
    y1 = pw(x, w1, b1)       # (7, Mp)
    y2 = pw(y1, w2, b2)      # (8, Mp)
    y3 = pw(y2, w3, b3)      # (2, Mp)  full chain; correct on the interior and
                             # on the innermost border ring (x == 0 there)

    # corr fixes the two outermost rings (conv3 / conv2 saw zero padding).
    o_ref[...] = y3 + corr_ref[...] + other_ref[0, 0]


@jax.jit
def _forward_jit(params, x1, other):
    w1, b1 = params["conv1"]
    w2, b2 = params["conv2"]
    w3, b3 = params["conv3"]
    N, Cin, H, W = x1.shape
    Cout = w3.shape[0]
    Hf, Wf = H + 6, W + 6              # each padded 1x1 conv grows spatial dims by 2
    M = N * Hf * Wf
    Mp = ((M + 127) // 128) * 128      # lane-dense, unmasked stores

    # --- layout plumbing (fused under jit): NCHW -> lane-dense (Cin, Mp) --------
    xp = jnp.pad(x1.astype(jnp.float32), ((0, 0), (0, 0), (3, 3), (3, 3)))
    xm = jnp.transpose(xp, (1, 0, 2, 3)).reshape(Cin, M)
    xm = jnp.pad(xm, ((0, 0), (0, Mp - M)))

    # --- trace-time constant ring masks (baked into the jit, zero runtime cost) -
    dh = np.minimum(np.arange(Hf), Hf - 1 - np.arange(Hf))
    dw = np.minimum(np.arange(Wf), Wf - 1 - np.arange(Wf))
    d = np.minimum(dh[:, None], dw[None, :])                 # ring index per pixel
    r0 = np.broadcast_to(d == 0, (N, Hf, Wf)).reshape(M).astype(np.float32)
    r1 = np.broadcast_to(d == 1, (N, Hf, Wf)).reshape(M).astype(np.float32)
    r0 = np.pad(r0, (0, Mp - M))
    r1 = np.pad(r1, (0, Mp - M))

    # --- border-ring correction (tiny XLA ops, fused under jit) -----------------
    #   ring 0 (outermost): conv3 saw zeros -> b3
    #   ring 1            : conv2 saw zeros -> W3 @ b2 + b3
    #   ring 2            : conv1 saw zeros -> chain(0) = z (already what kernel computes)
    b1v = b1.reshape(-1)
    b2v = b2.reshape(-1)
    b3v = b3.reshape(-1)
    z = w3 @ (w2 @ b1v + b2v) + b3v        # chain applied to a zero pixel, (2,)
    c1 = w3 @ b2v + b3v                     # ring-1 value, (2,)
    c0 = b3v                                # ring-0 value, (2,)
    corr = ((c0 - z)[:, None] * r0[None, :]
            + (c1 - z)[:, None] * r1[None, :]).astype(jnp.float32)   # (2, Mp)

    # --- pack all weights/biases into one (8, 32) slab (4 operands total) -------
    p = jnp.zeros((8, 32), jnp.float32)
    p = p.at[0:7, 0:3].set(w1)
    p = p.at[0:7, 3].set(b1v)
    p = p.at[0:8, 4:11].set(w2)
    p = p.at[0:8, 11].set(b2v)
    p = p.at[0:2, 12:20].set(w3)
    p = p.at[0:2, 20].set(b3v)

    other_arr = jnp.asarray(other, jnp.float32).reshape(1, 1)

    vmem = lambda: pl.BlockSpec(memory_space=pltpu.MemorySpace.VMEM)
    smem = lambda: pl.BlockSpec(memory_space=pltpu.MemorySpace.SMEM)

    out = pl.pallas_call(
        _fused_conv_chain_kernel,
        out_shape=jax.ShapeDtypeStruct((Cout, Mp), jnp.float32),
        in_specs=[vmem(),    # x slab
                  vmem(),    # packed params
                  vmem(),    # border correction
                  smem()],   # `other` scalar
        out_specs=vmem(),
    )(xm, p, corr, other_arr)

    # --- output plumbing (fused under jit): (Cout, M) -> NCHW -------------------
    y = out[:, :M].reshape(Cout, N, Hf, Wf)
    return jnp.transpose(y, (1, 0, 2, 3))


def model_forward(params, x1, other=1.0):
    """Forward of the PyTorch Model (padding1/padding2 default to None -> those
    conditional add/sub branches are skipped, matching the spec)."""
    return _forward_jit(params, x1, jnp.float32(other))


def init_params(key):
    """Deterministic parameter init (PyTorch-style uniform fan-in bounds)."""
    params = {}
    specs = {"conv1": (7, 3), "conv2": (8, 7), "conv3": (2, 8)}
    for name, (cout, cin) in specs.items():
        key, kw, kb = jax.random.split(key, 3)
        bound = 1.0 / jnp.sqrt(cin)  # 1x1 kernel -> fan_in = cin
        w = jax.random.uniform(kw, (cout, cin), jnp.float32, -bound, bound)
        b = jax.random.uniform(kb, (cout,), jnp.float32, -bound, bound)
        params[name] = (w, b)
    return params


def reference_forward(params, x1, other=1.0):
    """Pure-JAX reference for a sanity check."""
    def conv(x, w, b):
        xp = jnp.pad(x, ((0, 0), (0, 0), (1, 1), (1, 1)))
        return jnp.einsum("nchw,oc->nohw", xp, w) + b[None, :, None, None]
    v = conv(x1, *params["conv1"])
    v = conv(v, *params["conv2"])
    v = conv(v, *params["conv3"])
    return v + other


if __name__ == "__main__":
    key = jax.random.PRNGKey(0)
    kp, kx = jax.random.split(key)
    params = init_params(kp)

    # Small input consistent with the module: Cin must be 3.
    x1 = jax.random.normal(kx, (2, 3, 16, 16), jnp.float32)

    out = jax.block_until_ready(model_forward(params, x1, other=1.0))
    ref = reference_forward(params, x1, other=1.0)
    assert out.shape == (2, 2, 22, 22), out.shape  # 16 -> 18 -> 20 -> 22
    assert jnp.allclose(out, ref, atol=1e-4, rtol=1e-4)

    # Second `other` value: traced SMEM scalar path, no recompile of the jit.
    out2 = jax.block_until_ready(model_forward(params, x1, other=2.5))
    ref2 = reference_forward(params, x1, other=2.5)
    assert jnp.allclose(out2, ref2, atol=1e-4, rtol=1e-4)

    print("KERNEL_OK")
</pallas_src>

<mosaic_0001>
module attributes {stable_mosaic.version = 11 : i64} {
  func.func @_fused_conv_chain_kernel(%arg0: memref<3x1024xf32, #tpu.memory_space<vmem>>, %arg1: memref<8x32xf32, #tpu.memory_space<vmem>>, %arg2: memref<2x1024xf32, #tpu.memory_space<vmem>>, %arg3: memref<1x1xf32, #tpu.memory_space<smem>>, %arg4: memref<2x1024xf32, #tpu.memory_space<vmem>>) attributes {dimension_semantics = [], scalar_prefetch = 0 : i64, scratch_operands = 0 : i64, tpu.core_type = #tpu.core_type<tc>} {
    %c0 = arith.constant 0 : index
    %c0_0 = arith.constant 0 : index
    %0 = vector.load %arg1[%c0, %c0_0] : memref<8x32xf32, #tpu.memory_space<vmem>>, vector<8x32xf32>
    %1 = vector.extract_strided_slice %0 {offsets = [0, 0], sizes = [7, 3], strides = [1, 1]} : vector<8x32xf32> to vector<7x3xf32>
    %2 = vector.extract_strided_slice %0 {offsets = [0, 3], sizes = [7, 1], strides = [1, 1]} : vector<8x32xf32> to vector<7x1xf32>
    %3 = vector.extract_strided_slice %0 {offsets = [0, 4], sizes = [8, 7], strides = [1, 1]} : vector<8x32xf32> to vector<8x7xf32>
    %4 = vector.extract_strided_slice %0 {offsets = [0, 11], sizes = [8, 1], strides = [1, 1]} : vector<8x32xf32> to vector<8x1xf32>
    %5 = vector.extract_strided_slice %0 {offsets = [0, 12], sizes = [2, 8], strides = [1, 1]} : vector<8x32xf32> to vector<2x8xf32>
    %6 = vector.extract_strided_slice %0 {offsets = [0, 20], sizes = [2, 1], strides = [1, 1]} : vector<8x32xf32> to vector<2x1xf32>
    %c0_1 = arith.constant 0 : index
    %c0_2 = arith.constant 0 : index
    %7 = vector.load %arg0[%c0_1, %c0_2] : memref<3x1024xf32, #tpu.memory_space<vmem>>, vector<3x1024xf32>
    %8 = vector.shape_cast %2 : vector<7x1xf32> to vector<7x1xf32>
    %9 = vector.broadcast %8 : vector<7x1xf32> to vector<7x1024xf32>
    %10 = vector.extract_strided_slice %1 {offsets = [0, 0], sizes = [7, 1], strides = [1, 1]} : vector<7x3xf32> to vector<7x1xf32>
    %11 = vector.extract_strided_slice %7 {offsets = [0, 0], sizes = [1, 1024], strides = [1, 1]} : vector<3x1024xf32> to vector<1x1024xf32>
    %12 = vector.broadcast %10 : vector<7x1xf32> to vector<7x1024xf32>
    %13 = vector.broadcast %11 : vector<1x1024xf32> to vector<7x1024xf32>
    %14 = arith.mulf %12, %13 : vector<7x1024xf32>
    %15 = arith.addf %9, %14 : vector<7x1024xf32>
    %16 = vector.extract_strided_slice %1 {offsets = [0, 1], sizes = [7, 1], strides = [1, 1]} : vector<7x3xf32> to vector<7x1xf32>
    %17 = vector.extract_strided_slice %7 {offsets = [1, 0], sizes = [1, 1024], strides = [1, 1]} : vector<3x1024xf32> to vector<1x1024xf32>
    %18 = vector.broadcast %16 : vector<7x1xf32> to vector<7x1024xf32>
    %19 = vector.broadcast %17 : vector<1x1024xf32> to vector<7x1024xf32>
    %20 = arith.mulf %18, %19 : vector<7x1024xf32>
    %21 = arith.addf %15, %20 : vector<7x1024xf32>
    %22 = vector.extract_strided_slice %1 {offsets = [0, 2], sizes = [7, 1], strides = [1, 1]} : vector<7x3xf32> to vector<7x1xf32>
    %23 = vector.extract_strided_slice %7 {offsets = [2, 0], sizes = [1, 1024], strides = [1, 1]} : vector<3x1024xf32> to vector<1x1024xf32>
    %24 = vector.broadcast %22 : vector<7x1xf32> to vector<7x1024xf32>
    %25 = vector.broadcast %23 : vector<1x1024xf32> to vector<7x1024xf32>
    %26 = arith.mulf %24, %25 : vector<7x1024xf32>
    %27 = arith.addf %21, %26 : vector<7x1024xf32>
    %28 = vector.shape_cast %4 : vector<8x1xf32> to vector<8x1xf32>
    %29 = vector.broadcast %28 : vector<8x1xf32> to vector<8x1024xf32>
    %30 = vector.extract_strided_slice %3 {offsets = [0, 0], sizes = [8, 1], strides = [1, 1]} : vector<8x7xf32> to vector<8x1xf32>
    %31 = vector.extract_strided_slice %27 {offsets = [0, 0], sizes = [1, 1024], strides = [1, 1]} : vector<7x1024xf32> to vector<1x1024xf32>
    %32 = vector.broadcast %30 : vector<8x1xf32> to vector<8x1024xf32>
    %33 = vector.broadcast %31 : vector<1x1024xf32> to vector<8x1024xf32>
    %34 = arith.mulf %32, %33 : vector<8x1024xf32>
    %35 = arith.addf %29, %34 : vector<8x1024xf32>
    %36 = vector.extract_strided_slice %3 {offsets = [0, 1], sizes = [8, 1], strides = [1, 1]} : vector<8x7xf32> to vector<8x1xf32>
    %37 = vector.extract_strided_slice %27 {offsets = [1, 0], sizes = [1, 1024], strides = [1, 1]} : vector<7x1024xf32> to vector<1x1024xf32>
    %38 = vector.broadcast %36 : vector<8x1xf32> to vector<8x1024xf32>
    %39 = vector.broadcast %37 : vector<1x1024xf32> to vector<8x1024xf32>
    %40 = arith.mulf %38, %39 : vector<8x1024xf32>
    %41 = arith.addf %35, %40 : vector<8x1024xf32>
    %42 = vector.extract_strided_slice %3 {offsets = [0, 2], sizes = [8, 1], strides = [1, 1]} : vector<8x7xf32> to vector<8x1xf32>
    %43 = vector.extract_strided_slice %27 {offsets = [2, 0], sizes = [1, 1024], strides = [1, 1]} : vector<7x1024xf32> to vector<1x1024xf32>
    %44 = vector.broadcast %42 : vector<8x1xf32> to vector<8x1024xf32>
    %45 = vector.broadcast %43 : vector<1x1024xf32> to vector<8x1024xf32>
    %46 = arith.mulf %44, %45 : vector<8x1024xf32>
    %47 = arith.addf %41, %46 : vector<8x1024xf32>
    %48 = vector.extract_strided_slice %3 {offsets = [0, 3], sizes = [8, 1], strides = [1, 1]} : vector<8x7xf32> to vector<8x1xf32>
    %49 = vector.extract_strided_slice %27 {offsets = [3, 0], sizes = [1, 1024], strides = [1, 1]} : vector<7x1024xf32> to vector<1x1024xf32>
    %50 = vector.broadcast %48 : vector<8x1xf32> to vector<8x1024xf32>
    %51 = vector.broadcast %49 : vector<1x1024xf32> to vector<8x1024xf32>
    %52 = arith.mulf %50, %51 : vector<8x1024xf32>
    %53 = arith.addf %47, %52 : vector<8x1024xf32>
    %54 = vector.extract_strided_slice %3 {offsets = [0, 4], sizes = [8, 1], strides = [1, 1]} : vector<8x7xf32> to vector<8x1xf32>
    %55 = vector.extract_strided_slice %27 {offsets = [4, 0], sizes = [1, 1024], strides = [1, 1]} : vector<7x1024xf32> to vector<1x1024xf32>
    %56 = vector.broadcast %54 : vector<8x1xf32> to vector<8x1024xf32>
    %57 = vector.broadcast %55 : vector<1x1024xf32> to vector<8x1024xf32>
    %58 = arith.mulf %56, %57 : vector<8x1024xf32>
    %59 = arith.addf %53, %58 : vector<8x1024xf32>
    %60 = vector.extract_strided_slice %3 {offsets = [0, 5], sizes = [8, 1], strides = [1, 1]} : vector<8x7xf32> to vector<8x1xf32>
    %61 = vector.extract_strided_slice %27 {offsets = [5, 0], sizes = [1, 1024], strides = [1, 1]} : vector<7x1024xf32> to vector<1x1024xf32>
    %62 = vector.broadcast %60 : vector<8x1xf32> to vector<8x1024xf32>
    %63 = vector.broadcast %61 : vector<1x1024xf32> to vector<8x1024xf32>
    %64 = arith.mulf %62, %63 : vector<8x1024xf32>
    %65 = arith.addf %59, %64 : vector<8x1024xf32>
    %66 = vector.extract_strided_slice %3 {offsets = [0, 6], sizes = [8, 1], strides = [1, 1]} : vector<8x7xf32> to vector<8x1xf32>
    %67 = vector.extract_strided_slice %27 {offsets = [6, 0], sizes = [1, 1024], strides = [1, 1]} : vector<7x1024xf32> to vector<1x1024xf32>
    %68 = vector.broadcast %66 : vector<8x1xf32> to vector<8x1024xf32>
    %69 = vector.broadcast %67 : vector<1x1024xf32> to vector<8x1024xf32>
    %70 = arith.mulf %68, %69 : vector<8x1024xf32>
    %71 = arith.addf %65, %70 : vector<8x1024xf32>
    %72 = vector.shape_cast %6 : vector<2x1xf32> to vector<2x1xf32>
    %73 = vector.broadcast %72 : vector<2x1xf32> to vector<2x1024xf32>
    %74 = vector.extract_strided_slice %5 {offsets = [0, 0], sizes = [2, 1], strides = [1, 1]} : vector<2x8xf32> to vector<2x1xf32>
    %75 = vector.extract_strided_slice %71 {offsets = [0, 0], sizes = [1, 1024], strides = [1, 1]} : vector<8x1024xf32> to vector<1x1024xf32>
    %76 = vector.broadcast %74 : vector<2x1xf32> to vector<2x1024xf32>
    %77 = vector.broadcast %75 : vector<1x1024xf32> to vector<2x1024xf32>
    %78 = arith.mulf %76, %77 : vector<2x1024xf32>
    %79 = arith.addf %73, %78 : vector<2x1024xf32>
    %80 = vector.extract_strided_slice %5 {offsets = [0, 1], sizes = [2, 1], strides = [1, 1]} : vector<2x8xf32> to vector<2x1xf32>
    %81 = vector.extract_strided_slice %71 {offsets = [1, 0], sizes = [1, 1024], strides = [1, 1]} : vector<8x1024xf32> to vector<1x1024xf32>
    %82 = vector.broadcast %80 : vector<2x1xf32> to vector<2x1024xf32>
    %83 = vector.broadcast %81 : vector<1x1024xf32> to vector<2x1024xf32>
    %84 = arith.mulf %82, %83 : vector<2x1024xf32>
    %85 = arith.addf %79, %84 : vector<2x1024xf32>
    %86 = vector.extract_strided_slice %5 {offsets = [0, 2], sizes = [2, 1], strides = [1, 1]} : vector<2x8xf32> to vector<2x1xf32>
    %87 = vector.extract_strided_slice %71 {offsets = [2, 0], sizes = [1, 1024], strides = [1, 1]} : vector<8x1024xf32> to vector<1x1024xf32>
    %88 = vector.broadcast %86 : vector<2x1xf32> to vector<2x1024xf32>
    %89 = vector.broadcast %87 : vector<1x1024xf32> to vector<2x1024xf32>
    %90 = arith.mulf %88, %89 : vector<2x1024xf32>
    %91 = arith.addf %85, %90 : vector<2x1024xf32>
    %92 = vector.extract_strided_slice %5 {offsets = [0, 3], sizes = [2, 1], strides = [1, 1]} : vector<2x8xf32> to vector<2x1xf32>
    %93 = vector.extract_strided_slice %71 {offsets = [3, 0], sizes = [1, 1024], strides = [1, 1]} : vector<8x1024xf32> to vector<1x1024xf32>
    %94 = vector.broadcast %92 : vector<2x1xf32> to vector<2x1024xf32>
    %95 = vector.broadcast %93 : vector<1x1024xf32> to vector<2x1024xf32>
    %96 = arith.mulf %94, %95 : vector<2x1024xf32>
    %97 = arith.addf %91, %96 : vector<2x1024xf32>
    %98 = vector.extract_strided_slice %5 {offsets = [0, 4], sizes = [2, 1], strides = [1, 1]} : vector<2x8xf32> to vector<2x1xf32>
    %99 = vector.extract_strided_slice %71 {offsets = [4, 0], sizes = [1, 1024], strides = [1, 1]} : vector<8x1024xf32> to vector<1x1024xf32>
    %100 = vector.broadcast %98 : vector<2x1xf32> to vector<2x1024xf32>
    %101 = vector.broadcast %99 : vector<1x1024xf32> to vector<2x1024xf32>
    %102 = arith.mulf %100, %101 : vector<2x1024xf32>
    %103 = arith.addf %97, %102 : vector<2x1024xf32>
    %104 = vector.extract_strided_slice %5 {offsets = [0, 5], sizes = [2, 1], strides = [1, 1]} : vector<2x8xf32> to vector<2x1xf32>
    %105 = vector.extract_strided_slice %71 {offsets = [5, 0], sizes = [1, 1024], strides = [1, 1]} : vector<8x1024xf32> to vector<1x1024xf32>
    %106 = vector.broadcast %104 : vector<2x1xf32> to vector<2x1024xf32>
    %107 = vector.broadcast %105 : vector<1x1024xf32> to vector<2x1024xf32>
    %108 = arith.mulf %106, %107 : vector<2x1024xf32>
    %109 = arith.addf %103, %108 : vector<2x1024xf32>
    %110 = vector.extract_strided_slice %5 {offsets = [0, 6], sizes = [2, 1], strides = [1, 1]} : vector<2x8xf32> to vector<2x1xf32>
    %111 = vector.extract_strided_slice %71 {offsets = [6, 0], sizes = [1, 1024], strides = [1, 1]} : vector<8x1024xf32> to vector<1x1024xf32>
    %112 = vector.broadcast %110 : vector<2x1xf32> to vector<2x1024xf32>
    %113 = vector.broadcast %111 : vector<1x1024xf32> to vector<2x1024xf32>
    %114 = arith.mulf %112, %113 : vector<2x1024xf32>
    %115 = arith.addf %109, %114 : vector<2x1024xf32>
    %116 = vector.extract_strided_slice %5 {offsets = [0, 7], sizes = [2, 1], strides = [1, 1]} : vector<2x8xf32> to vector<2x1xf32>
    %117 = vector.extract_strided_slice %71 {offsets = [7, 0], sizes = [1, 1024], strides = [1, 1]} : vector<8x1024xf32> to vector<1x1024xf32>
    %118 = vector.broadcast %116 : vector<2x1xf32> to vector<2x1024xf32>
    %119 = vector.broadcast %117 : vector<1x1024xf32> to vector<2x1024xf32>
    %120 = arith.mulf %118, %119 : vector<2x1024xf32>
    %121 = arith.addf %115, %120 : vector<2x1024xf32>
    %c0_3 = arith.constant 0 : index
    %c0_4 = arith.constant 0 : index
    %122 = vector.load %arg2[%c0_3, %c0_4] : memref<2x1024xf32, #tpu.memory_space<vmem>>, vector<2x1024xf32>
    %123 = arith.addf %121, %122 : vector<2x1024xf32>
    %c0_5 = arith.constant 0 : index
    %c0_6 = arith.constant 0 : index
    %124 = memref.load %arg3[%c0_5, %c0_6] : memref<1x1xf32, #tpu.memory_space<smem>>
    %125 = vector.broadcast %124 : f32 to vector<2x1024xf32>
    %126 = arith.addf %123, %125 : vector<2x1024xf32>
    %c0_7 = arith.constant 0 : index
    %c0_8 = arith.constant 0 : index
    %127 = vector.load %arg4[%c0_7, %c0_8] : memref<2x1024xf32, #tpu.memory_space<vmem>>, vector<2x1024xf32>
    tpu.vector_store %arg4[%c0_7, %c0_8], %126 {strides = array<i32>} : memref<2x1024xf32, #tpu.memory_space<vmem>>, vector<2x1024xf32>,
    return
  }
}

</mosaic_0001>

<bundles_post_ra>
// kernel: _forward_jit.1
= control target key start
LH: loop header
LB: loop body
LE: loop exit
PB: predicated region body
PF: predicated region fallthrough
CT: control target
= control target key end

     0   :  { %v1255_v0 = vmov 1   ;;  %v1256_v1 = vmov 0   ;;  %v1257_v3 = vmov 2   ;;  %v1258_v4 = vmov 3   ;;  %s1859_s1 = inlined_call_operand.vmem [shape: f32[8,32], index: 1, kind: input, shape index: {}]   ;;  %s1860_s0 = inlined_call_operand.vmem [shape: f32[3,1024], index: 0, kind: input, shape index: {}]   ;;  %s1861_s2 = inlined_call_operand.vmem [shape: f32[2,1024], index: 2, kind: input, shape index: {}]   ;;  %s1862_s3 = inlined_call_operand.<no memory space> [shape: f32[1,1], index: 3, kind: input, shape index: {}]   ;;  %s1863_s4 = inlined_call_operand.vmem [shape: f32[2,1024], index: 4, kind: output, shape index: {}]  }
   0x1   :  { %1234 = vset.pattern.permute.xlu1 %v1255_v0  ;;  %1232 = vset.pattern.permute.xlu0 %v1256_v1  ;;  %v18_v2 = vld [vmem:[%s1859_s1] sm:$0xff]  ;;  %v1259_v5 = vmov 4   ;;  %v1260_v6 = vmov 11   ;;  %v1261_v7 = vmov 5   ;;  %v1262_v8 = vmov 7   ;;  %v1097_v56 = vld [vmem:[%s1861_s2 + $0x8] sm:$0xff] }
   0x2   :  { %125 = vperm.xlu1 %1234, %v18_v2   ;;  %29 = vperm.xlu0 %1232, %v18_v2   ;;  %v1263_v9 = vmov 6   ;;  %v1264_v10 = vmov 10   ;;  %v1265_v11 = vmov 8   ;;  %v1266_v12 = vmov 13   ;;  %v1316_v26 = vld [vmem:[%s1860_s0] sm:$0x77] }
   0x3   :  { %v1267_v13 = vmov 9   ;;  %v1268_v14 = vmov 16   ;;  %v1269_v15 = vmov 12   ;;  %v1270_v16 = vmov 19   ;;  %v1321_v27 = vld [vmem:[%s1860_s0 + $0x8] sm:$0x77] }
   0x4   :  { %v1271_v17 = vmov 20   ;;  %v1272_v18 = vmov 14   ;;  %v1273_v19 = vmov 15   ;;  %v1274_v20 = vmov 17   ;;  %v1326_v28 = vld [vmem:[%s1860_s0 + $0x10] sm:$0x77] }
   0x5   :  { %v1275_v21 = vmov 18   ;;  %v36_v22 = vlaneseq  ;;  %v1331_v29 = vld [vmem:[%s1860_s0 + $0x18] sm:$0x77]  ;;  %v1276_v35 = vmov 1983009808   ;;  %v1096_v55 = vld [vmem:[%s1861_s2] sm:$0xff] }
   0x6   :  { %1235 = vset.pattern.permute.xlu1 %v1257_v3  ;;  %1233 = vset.pattern.permute.xlu0 %v1258_v4  ;;  %v1102_v36 = vunpack.c.l.s4 %v1276_v35  ;;  %v1117_v4 = vcombine.high %v1097_v56, %v1097_v56 }
   0x7   :  { %217 = vperm.xlu1 %1235, %v18_v2   ;;  %25 = vperm.xlu0 %1233, %v18_v2   ;;  %v1305_v23 = vshrl.u32 %v36_v22, 7 }
   0x8   :  { %v1103_v50 = vunpack.c.0.s8 %v1102_v36 }
   0x9   :  { %v1308_v24 = vsub.s32 1, %v1305_v23  ;;  %v1311_v25 = vsub.s32 5, %v1305_v23  ;;  %v1336_v31 = vsub.s32 0, %v1305_v23  ;;  %v1339_v32 = vsub.s32 4, %v1305_v23 }
   0xa   :  { %v1356_v42 = vsub.s32 2, %v1305_v23  ;;  %v1364_v46 = vsub.s32 6, %v1305_v23  ;;  %v1395_v3 = vsub.s32 %v1103_v50, %v1305_v23 }
   0xb   :  { %1236 = vset.pattern.permute.xlu1 %v1259_v5  ;;  %1237 = vset.pattern.permute.xlu0 %v1260_v6  ;;  %v131_v30 = vrot.slane %v1316_v26, %v1308_v24  ;;  %v135_v33 = vrot.slane %v1316_v26, %v1311_v25  ;;  %v139_v34 = vrot.slane %v1321_v27, %v1308_v24 }
   0xc   :  { %313 = vperm.xlu1 %1236, %v18_v2   ;;  %309 = vperm.xlu0 %1237, %v18_v2   ;;  %v143_v37 = vrot.slane %v1321_v27, %v1311_v25  ;;  %v147_v38 = vrot.slane %v1326_v28, %v1308_v24  ;;  %v151_v39 = vrot.slane %v1326_v28, %v1311_v25 }
   0xd   :  { %v155_v40 = vrot.slane %v1331_v29, %v1308_v24  ;;  %v159_v41 = vrot.slane %v1331_v29, %v1311_v25  ;;  %v171_v43 = vrot.slane %v131_v30, %v1308_v24  ;;  %v39_v44 = vrot.slane %v1316_v26, %v1336_v31  ;;  %1871 = vst [vmem:[#allocation3_spill] sm:$0xff] %v1395_v3 }
   0xe   :  { %v43_v45 = vrot.slane %v1316_v26, %v1339_v32  ;;  %v175_v47 = vrot.slane %v135_v33, %v1308_v24  ;;  %v179_v48 = vrot.slane %v139_v34, %v1308_v24  ;;  %v47_v49 = vrot.slane %v1321_v27, %v1336_v31 }
   0xf   :  { %v183_v51 = vrot.slane %v143_v37, %v1308_v24  ;;  %v187_v52 = vrot.slane %v147_v38, %v1308_v24  ;;  %v51_v53 = vrot.slane %v1321_v27, %v1339_v32  ;;  %v55_v54 = vrot.slane %v1326_v28, %v1336_v31 }
  0x10   :  { %1238 = vset.pattern.permute.xlu1 %v1261_v7  ;;  %1240 = vset.pattern.permute.xlu0 %v1262_v8  ;;  %v191_v57 = vrot.slane %v151_v39, %v1308_v24  ;;  %v195_v58 = vrot.slane %v155_v40, %v1308_v24  ;;  %v199_v59 = vrot.slane %v159_v41, %v1308_v24  ;;  %v1442_v38 = vsub.s32 7, %v1305_v23 }
  0x11   :  { %365 = vperm.xlu1 %1238, %v18_v2   ;;  %469 = vperm.xlu0 %1240, %v18_v2   ;;  %v59_v60 = vrot.slane %v1326_v28, %v1339_v32  ;;  %v63_v61 = vrot.slane %v1331_v29, %v1336_v31  ;;  %v67_v62 = vrot.slane %v1331_v29, %v1339_v32  ;;  %v1447_v39 = vstv %s1862_s3 }
  0x12   :  { %v79_v63 = vrot.slane %v39_v44, %v1336_v31  ;;  %v83_v0 = vrot.slane %v43_v45, %v1336_v31  ;;  %v87_v1 = vrot.slane %v47_v49, %v1336_v31  ;;  %v91_v5 = vrot.slane %v51_v53, %v1336_v31  ;;  %1874 = vst [vmem:[#allocation6_spill] sm:$0xff] %v1447_v39 }
  0x13   :  { %v95_v6 = vrot.slane %v55_v54, %v1336_v31  ;;  %v223_v7 = vrot.slane %v1316_v26, %v1356_v42  ;;  %v227_v8 = vrot.slane %v1316_v26, %v1364_v46 }
  0x15   :  { %1239 = vset.pattern.permute.xlu1 %v1263_v9  ;;  %1243 = vset.pattern.permute.xlu0 %v1264_v10  ;;  %v231_v9 = vrot.slane %v1321_v27, %v1356_v42  ;;  %v235_v10 = vrot.slane %v1321_v27, %v1364_v46  ;;  %v263_v22 = vrot.slane %v223_v7, %v1356_v42  ;;  %v1433_v27 = vsub.s32 3, %v1305_v23 }
  0x16   :  { %417 = vperm.xlu1 %1239, %v18_v2   ;;  %625 = vperm.xlu0 %1243, %v18_v2   ;;  %v267_v26 = vrot.slane %v227_v8, %v1356_v42 }
  0x1a   :  { %1241 = vset.pattern.permute.xlu1 %v1265_v11  ;;  %1246 = vset.pattern.permute.xlu0 %v1266_v12  ;;  %v239_v11 = vrot.slane %v1326_v28, %v1356_v42  ;;  %v243_v12 = vrot.slane %v1326_v28, %v1364_v46  ;;  %v271_v28 = vrot.slane %v231_v9, %v1356_v42 }
  0x1b   :  { %521 = vperm.xlu1 %1241, %v18_v2   ;;  %733 = vperm.xlu0 %1246, %v18_v2  }
  0x1c   :  { %v279_v30 = vrot.slane %v239_v11, %v1356_v42  ;;  %v283_v33 = vrot.slane %v243_v12, %v1356_v42 }
  0x1f   :  { %1242 = vset.pattern.permute.xlu1 %v1267_v13  ;;  %1249 = vset.pattern.permute.xlu0 %v1268_v14  ;;  %v99_v13 = vrot.slane %v59_v60, %v1336_v31  ;;  %v103_v14 = vrot.slane %v63_v61, %v1336_v31 }
  0x20   :  { %573 = vperm.xlu1 %1242, %v18_v2   ;;  %889 = vperm.xlu0 %1249, %v18_v2  }
  0x24   :  { %1244 = vset.pattern.permute.xlu1 %v1269_v15  ;;  %1252 = vset.pattern.permute.xlu0 %v1270_v16  ;;  %v247_v15 = vrot.slane %v1331_v29, %v1356_v42  ;;  %v251_v16 = vrot.slane %v1331_v29, %v1364_v46  ;;  %v275_v29 = vrot.slane %v235_v10, %v1356_v42 }
  0x25   :  { %681 = vperm.xlu1 %1244, %v18_v2   ;;  %1045 = vperm.xlu0 %1252, %v18_v2  }
  0x26   :  { %v287_v36 = vrot.slane %v247_v15, %v1356_v42  ;;  %v291_v37 = vrot.slane %v251_v16, %v1356_v42 }
  0x29   :  { %1245 = vset.pattern.permute.xlu1 %v1271_v17  ;;  %v1418_v17 = vrot.slane %v1096_v55, %v1395_v3 }
  0x2a   :  { %677 = vperm.xlu1 %1245, %v18_v2  }
  0x2e   :  { %1247 = vset.pattern.permute.xlu1 %v1272_v18 }
  0x2f   :  { %785 = vperm.xlu1 %1247, %v18_v2  }
  0x33   :  { %1248 = vset.pattern.permute.xlu1 %v1273_v19  ;;  %v1424_v19 = vrot.slane %v1097_v56, %v1395_v3 }
  0x34   :  { %837 = vperm.xlu1 %1248, %v18_v2  }
  0x35   :  { %1872 = vst [vmem:[#allocation4_spill] sm:$0xff] %v1424_v19 }
  0x38   :  { %1250 = vset.pattern.permute.xlu1 %v1274_v20  ;;  %v1427_v20 = vrot.slane %v1117_v4, %v1395_v3 }
  0x39   :  { %941 = vperm.xlu1 %1250, %v18_v2  }
  0x3a   :  { %1873 = vst [vmem:[#allocation5_spill] sm:$0xff] %v1427_v20 }
  0x3d   :  { %1251 = vset.pattern.permute.xlu1 %v1275_v21  ;;  %v107_v21 = vrot.slane %v67_v62, %v1336_v31 }
  0x3e   :  { %993 = vperm.xlu1 %1251, %v18_v2   ;;  %v1100_v2 = vcombine.high %v1096_v55, %v1096_v55 }
  0x40   :  { %v1421_v18 = vrot.slane %v1100_v2, %v1395_v3 }
  0x81   :  { %v126_v34 = vpop.permute.xlu1 %125  ;;  %v30_v35 = vpop.permute.xlu0 %29 }
  0x82   :  { %v200_v49 = vmul.f32 %v171_v43, %v126_v34  ;;  %v201_v23 = vmul.f32 %v175_v47, %v126_v34  ;;  %v202_v50 = vmul.f32 %v179_v48, %v126_v34  ;;  %v203_v53 = vmul.f32 %v183_v51, %v126_v34 }
  0x83   :  { %v204_v54 = vmul.f32 %v187_v52, %v126_v34  ;;  %v205_v55 = vmul.f32 %v191_v57, %v126_v34  ;;  %v206_v56 = vmul.f32 %v195_v58, %v126_v34  ;;  %v207_v60 = vmul.f32 %v199_v59, %v126_v34 }
  0x84   :  { %v108_v61 = vmul.f32 %v79_v63, %v30_v35  ;;  %v109_v62 = vmul.f32 %v83_v0, %v30_v35  ;;  %v110_v2 = vmul.f32 %v87_v1, %v30_v35  ;;  %v111_v4 = vmul.f32 %v91_v5, %v30_v35 }
  0x85   :  { %v112_v7 = vmul.f32 %v95_v6, %v30_v35  ;;  %v113_v8 = vmul.f32 %v99_v13, %v30_v35  ;;  %v114_v9 = vmul.f32 %v103_v14, %v30_v35  ;;  %v115_v10 = vmul.f32 %v107_v21, %v30_v35 }
  0x86   :  { %v218_v11 = vpop.permute.xlu1 %217  ;;  %v26_v12 = vpop.permute.xlu0 %25 }
  0x87   :  { %v292_v15 = vmul.f32 %v263_v22, %v218_v11  ;;  %v293_v16 = vmul.f32 %v267_v26, %v218_v11  ;;  %v294_v43 = vmul.f32 %v271_v28, %v218_v11  ;;  %v295_v47 = vmul.f32 %v275_v29, %v218_v11 }
  0x88   :  { %v296_v48 = vmul.f32 %v279_v30, %v218_v11  ;;  %v297_v51 = vmul.f32 %v283_v33, %v218_v11  ;;  %v298_v52 = vmul.f32 %v287_v36, %v218_v11  ;;  %v299_v57 = vmul.f32 %v291_v37, %v218_v11 }
  0x89   :  { %v116_v58 = vadd.f32 %v108_v61, %v26_v12  ;;  %v117_v59 = vadd.f32 %v109_v62, %v26_v12  ;;  %v118_v63 = vadd.f32 %v110_v2, %v26_v12  ;;  %v119_v0 = vadd.f32 %v111_v4, %v26_v12 }
  0x8a   :  { %v120_v1 = vadd.f32 %v112_v7, %v26_v12  ;;  %v121_v5 = vadd.f32 %v113_v8, %v26_v12  ;;  %v122_v6 = vadd.f32 %v114_v9, %v26_v12  ;;  %v123_v13 = vadd.f32 %v115_v10, %v26_v12 }
  0x8b   :  { %v208_v14 = vadd.f32 %v200_v49, %v116_v58  ;;  %v209_v21 = vadd.f32 %v201_v23, %v117_v59  ;;  %v210_v34 = vadd.f32 %v202_v50, %v118_v63  ;;  %v211_v35 = vadd.f32 %v203_v53, %v119_v0  ;;  %v314_v50 = vpop.permute.xlu1 %313 }
  0x8c   :  { %v212_v22 = vadd.f32 %v204_v54, %v120_v1  ;;  %v213_v26 = vadd.f32 %v205_v55, %v121_v5  ;;  %v214_v28 = vadd.f32 %v206_v56, %v122_v6  ;;  %v215_v29 = vadd.f32 %v207_v60, %v123_v13 }
  0x8d   :  { %v1457_v30 = vadd.f32 %v292_v15, %v208_v14  ;;  %v1459_v33 = vadd.f32 %v293_v16, %v209_v21  ;;  %v1461_v36 = vadd.f32 %v294_v43, %v210_v34  ;;  %v1463_v37 = vadd.f32 %v295_v47, %v211_v35  ;;  %v310_v47 = vpop.permute.xlu0 %309 }
  0x8e   :  { %v1465_v61 = vadd.f32 %v296_v48, %v212_v22  ;;  %v1467_v62 = vadd.f32 %v297_v51, %v213_v26  ;;  %v1469_v49 = vadd.f32 %v298_v52, %v214_v28  ;;  %v1471_v23 = vadd.f32 %v299_v57, %v215_v29 }
  0x8f   :  { %v319_v53 = vrot.slane %v1457_v30, %v1336_v31  ;;  %v323_v54 = vrot.slane %v1459_v33, %v1336_v31  ;;  %v327_v55 = vrot.slane %v1461_v36, %v1336_v31  ;;  %v331_v56 = vrot.slane %v1463_v37, %v1336_v31 }
  0x90   :  { %v335_v60 = vrot.slane %v1465_v61, %v1336_v31  ;;  %v339_v2 = vrot.slane %v1467_v62, %v1336_v31  ;;  %v343_v4 = vrot.slane %v1469_v49, %v1336_v31  ;;  %v347_v7 = vrot.slane %v1471_v23, %v1336_v31  ;;  %v366_v1 = vpop.permute.xlu1 %365 }
  0x91   :  { %v348_v8 = vmul.f32 %v319_v53, %v314_v50  ;;  %v349_v9 = vmul.f32 %v323_v54, %v314_v50  ;;  %v350_v10 = vmul.f32 %v327_v55, %v314_v50  ;;  %v351_v11 = vmul.f32 %v331_v56, %v314_v50 }
  0x92   :  { %v352_v12 = vmul.f32 %v335_v60, %v314_v50  ;;  %v353_v15 = vmul.f32 %v339_v2, %v314_v50  ;;  %v354_v16 = vmul.f32 %v343_v4, %v314_v50  ;;  %v355_v43 = vmul.f32 %v347_v7, %v314_v50 }
  0x93   :  { %v356_v48 = vadd.f32 %v348_v8, %v310_v47  ;;  %v357_v51 = vadd.f32 %v349_v9, %v310_v47  ;;  %v358_v52 = vadd.f32 %v350_v10, %v310_v47  ;;  %v359_v57 = vadd.f32 %v351_v11, %v310_v47 }
  0x94   :  { %v360_v58 = vadd.f32 %v352_v12, %v310_v47  ;;  %v361_v59 = vadd.f32 %v353_v15, %v310_v47  ;;  %v362_v63 = vadd.f32 %v354_v16, %v310_v47  ;;  %v363_v0 = vadd.f32 %v355_v43, %v310_v47  ;;  %v470_v12 = vpop.permute.xlu0 %469 }
  0x95   :  { %v371_v5 = vrot.slane %v1457_v30, %v1308_v24  ;;  %v375_v6 = vrot.slane %v1459_v33, %v1308_v24  ;;  %v379_v13 = vrot.slane %v1461_v36, %v1308_v24  ;;  %v383_v14 = vrot.slane %v1463_v37, %v1308_v24 }
  0x96   :  { %v387_v21 = vrot.slane %v1465_v61, %v1308_v24  ;;  %v391_v34 = vrot.slane %v1467_v62, %v1308_v24  ;;  %v395_v35 = vrot.slane %v1469_v49, %v1308_v24  ;;  %v399_v22 = vrot.slane %v1471_v23, %v1308_v24 }
  0x97   :  { %v400_v26 = vmul.f32 %v371_v5, %v366_v1  ;;  %v401_v28 = vmul.f32 %v375_v6, %v366_v1  ;;  %v402_v29 = vmul.f32 %v379_v13, %v366_v1  ;;  %v403_v50 = vmul.f32 %v383_v14, %v366_v1  ;;  %v418_v14 = vpop.permute.xlu1 %417 }
  0x98   :  { %v404_v53 = vmul.f32 %v387_v21, %v366_v1  ;;  %v405_v54 = vmul.f32 %v391_v34, %v366_v1  ;;  %v406_v55 = vmul.f32 %v395_v35, %v366_v1  ;;  %v407_v56 = vmul.f32 %v399_v22, %v366_v1  ;;  %v626_v40 = vpop.permute.xlu0 %625 }
  0x99   :  { %v408_v60 = vadd.f32 %v400_v26, %v356_v48  ;;  %v409_v2 = vadd.f32 %v401_v28, %v357_v51  ;;  %v410_v4 = vadd.f32 %v402_v29, %v358_v52  ;;  %v411_v7 = vadd.f32 %v403_v50, %v359_v57 }
  0x9a   :  { %v412_v8 = vadd.f32 %v404_v53, %v360_v58  ;;  %v413_v9 = vadd.f32 %v405_v54, %v361_v59  ;;  %v414_v10 = vadd.f32 %v406_v55, %v362_v63  ;;  %v415_v11 = vadd.f32 %v407_v56, %v363_v0 }
  0x9b   :  { %v475_v15 = vrot.slane %v1457_v30, %v1433_v27  ;;  %v479_v16 = vrot.slane %v1459_v33, %v1433_v27  ;;  %v483_v43 = vrot.slane %v1461_v36, %v1433_v27  ;;  %v487_v47 = vrot.slane %v1463_v37, %v1433_v27 }
  0x9c   :  { %v491_v48 = vrot.slane %v1465_v61, %v1433_v27  ;;  %v495_v51 = vrot.slane %v1467_v62, %v1433_v27  ;;  %v499_v52 = vrot.slane %v1469_v49, %v1433_v27  ;;  %v503_v57 = vrot.slane %v1471_v23, %v1433_v27 }
  0x9d   :  { %v504_v58 = vmul.f32 %v475_v15, %v470_v12  ;;  %v505_v59 = vmul.f32 %v479_v16, %v470_v12  ;;  %v506_v63 = vmul.f32 %v483_v43, %v470_v12  ;;  %v507_v0 = vmul.f32 %v487_v47, %v470_v12 }
  0x9e   :  { %v508_v1 = vmul.f32 %v491_v48, %v470_v12  ;;  %v509_v5 = vmul.f32 %v495_v51, %v470_v12  ;;  %v510_v6 = vmul.f32 %v499_v52, %v470_v12  ;;  %v511_v13 = vmul.f32 %v503_v57, %v470_v12 }
  0x9f   :  { %v423_v21 = vrot.slane %v1457_v30, %v1356_v42  ;;  %v427_v34 = vrot.slane %v1459_v33, %v1356_v42  ;;  %v431_v35 = vrot.slane %v1461_v36, %v1356_v42  ;;  %v435_v22 = vrot.slane %v1463_v37, %v1356_v42 }
  0xa0   :  { %v439_v26 = vrot.slane %v1465_v61, %v1356_v42  ;;  %v443_v28 = vrot.slane %v1467_v62, %v1356_v42  ;;  %v447_v29 = vrot.slane %v1469_v49, %v1356_v42  ;;  %v451_v50 = vrot.slane %v1471_v23, %v1356_v42 }
  0xa1   :  { %v452_v53 = vmul.f32 %v423_v21, %v418_v14  ;;  %v453_v54 = vmul.f32 %v427_v34, %v418_v14  ;;  %v454_v55 = vmul.f32 %v431_v35, %v418_v14  ;;  %v455_v56 = vmul.f32 %v435_v22, %v418_v14 }
  0xa2   :  { %v456_v12 = vmul.f32 %v439_v26, %v418_v14  ;;  %v457_v15 = vmul.f32 %v443_v28, %v418_v14  ;;  %v458_v16 = vmul.f32 %v447_v29, %v418_v14  ;;  %v459_v43 = vmul.f32 %v451_v50, %v418_v14 }
  0xa3   :  { %v460_v47 = vadd.f32 %v452_v53, %v408_v60  ;;  %v461_v48 = vadd.f32 %v453_v54, %v409_v2  ;;  %v462_v51 = vadd.f32 %v454_v55, %v410_v4  ;;  %v463_v52 = vadd.f32 %v455_v56, %v411_v7 }
  0xa4   :  { %v464_v57 = vadd.f32 %v456_v12, %v412_v8  ;;  %v465_v45 = vadd.f32 %v457_v15, %v413_v9  ;;  %v466_v44 = vadd.f32 %v458_v16, %v414_v10  ;;  %v467_v41 = vadd.f32 %v459_v43, %v415_v11 }
  0xa5   :  { %v631_v3 = vrot.slane %v1457_v30, %v1364_v46  ;;  %v635_v21 = vrot.slane %v1459_v33, %v1364_v46  ;;  %v639_v34 = vrot.slane %v1461_v36, %v1364_v46  ;;  %v643_v60 = vrot.slane %v1463_v37, %v1364_v46 }
  0xa6   :  { %v647_v2 = vrot.slane %v1465_v61, %v1364_v46  ;;  %v651_v4 = vrot.slane %v1467_v62, %v1364_v46  ;;  %v655_v7 = vrot.slane %v1469_v49, %v1364_v46  ;;  %v659_v8 = vrot.slane %v1471_v23, %v1364_v46 }
  0xa7   :  { %v1553_v9 = vmul.f32 %v631_v3, %v626_v40  ;;  %v1555_v10 = vmul.f32 %v635_v21, %v626_v40  ;;  %v1557_v11 = vmul.f32 %v639_v34, %v626_v40  ;;  %v1559_v14 = vmul.f32 %v643_v60, %v626_v40  ;;  %v522_v3 = vpop.permute.xlu1 %521 }
  0xa8   :  { %v1561_v35 = vmul.f32 %v647_v2, %v626_v40  ;;  %v1563_v22 = vmul.f32 %v651_v4, %v626_v40  ;;  %v1565_v26 = vmul.f32 %v655_v7, %v626_v40  ;;  %v1567_v28 = vmul.f32 %v659_v8, %v626_v40 }
  0xa9   :  { %v512_v29 = vadd.f32 %v504_v58, %v460_v47  ;;  %v513_v50 = vadd.f32 %v505_v59, %v461_v48  ;;  %v514_v53 = vadd.f32 %v506_v63, %v462_v51  ;;  %v515_v54 = vadd.f32 %v507_v0, %v463_v52 }
  0xaa   :  { %v516_v55 = vadd.f32 %v508_v1, %v464_v57  ;;  %v517_v56 = vadd.f32 %v509_v5, %v465_v45  ;;  %v518_v12 = vadd.f32 %v510_v6, %v466_v44  ;;  %v519_v15 = vadd.f32 %v511_v13, %v467_v41 }
  0xab   :  { %v527_v16 = vrot.slane %v1457_v30, %v1339_v32  ;;  %v531_v43 = vrot.slane %v1459_v33, %v1339_v32  ;;  %v535_v21 = vrot.slane %v1461_v36, %v1339_v32  ;;  %v539_v40 = vrot.slane %v1463_v37, %v1339_v32  ;;  %v574_v7 = vpop.permute.xlu1 %573 }
  0xac   :  { %v543_v58 = vrot.slane %v1465_v61, %v1339_v32  ;;  %v547_v45 = vrot.slane %v1467_v62, %v1339_v32  ;;  %v551_v41 = vrot.slane %v1469_v49, %v1339_v32  ;;  %v555_v44 = vrot.slane %v1471_v23, %v1339_v32 }
  0xad   :  { %v556_v59 = vmul.f32 %v527_v16, %v522_v3  ;;  %v557_v63 = vmul.f32 %v531_v43, %v522_v3  ;;  %v558_v0 = vmul.f32 %v535_v21, %v522_v3  ;;  %v559_v1 = vmul.f32 %v539_v40, %v522_v3 }
  0xae   :  { %v560_v5 = vmul.f32 %v543_v58, %v522_v3  ;;  %v561_v6 = vmul.f32 %v547_v45, %v522_v3  ;;  %v562_v13 = vmul.f32 %v551_v41, %v522_v3  ;;  %v563_v47 = vmul.f32 %v555_v44, %v522_v3 }
  0xaf   :  { %v564_v48 = vadd.f32 %v556_v59, %v512_v29  ;;  %v565_v51 = vadd.f32 %v557_v63, %v513_v50  ;;  %v566_v52 = vadd.f32 %v558_v0, %v514_v53  ;;  %v567_v57 = vadd.f32 %v559_v1, %v515_v54 }
  0xb0   :  { %v568_v34 = vadd.f32 %v560_v5, %v516_v55  ;;  %v569_v60 = vadd.f32 %v561_v6, %v517_v56  ;;  %v570_v2 = vadd.f32 %v562_v13, %v518_v12  ;;  %v571_v4 = vadd.f32 %v563_v47, %v519_v15 }
  0xb1   :  { %v579_v8 = vrot.slane %v1457_v30, %v1311_v25  ;;  %v583_v16 = vrot.slane %v1459_v33, %v1311_v25  ;;  %v587_v43 = vrot.slane %v1461_v36, %v1311_v25  ;;  %v591_v29 = vrot.slane %v1463_v37, %v1311_v25 }
  0xb2   :  { %v595_v50 = vrot.slane %v1465_v61, %v1311_v25  ;;  %v599_v53 = vrot.slane %v1467_v62, %v1311_v25  ;;  %v603_v54 = vrot.slane %v1469_v49, %v1311_v25  ;;  %v607_v30 = vrot.slane %v1471_v23, %v1311_v25 }
  0xb3   :  { %v608_v3 = vmul.f32 %v579_v8, %v574_v7  ;;  %v609_v33 = vmul.f32 %v583_v16, %v574_v7  ;;  %v610_v55 = vmul.f32 %v587_v43, %v574_v7  ;;  %v611_v56 = vmul.f32 %v591_v29, %v574_v7 }
  0xb4   :  { %v612_v36 = vmul.f32 %v595_v50, %v574_v7  ;;  %v613_v12 = vmul.f32 %v599_v53, %v574_v7  ;;  %v614_v15 = vmul.f32 %v603_v54, %v574_v7  ;;  %v615_v37 = vmul.f32 %v607_v30, %v574_v7 }
  0xb5   :  { %v616_v21 = vadd.f32 %v608_v3, %v564_v48  ;;  %v617_v40 = vadd.f32 %v609_v33, %v565_v51  ;;  %v618_v61 = vadd.f32 %v610_v55, %v566_v52  ;;  %v619_v58 = vadd.f32 %v611_v56, %v567_v57 }
  0xb6   :  { %v620_v45 = vadd.f32 %v612_v36, %v568_v34  ;;  %v621_v62 = vadd.f32 %v613_v12, %v569_v60  ;;  %v622_v41 = vadd.f32 %v614_v15, %v570_v2  ;;  %v623_v44 = vadd.f32 %v615_v37, %v571_v4  ;;  %v682_v15 = vpop.permute.xlu1 %681 }
  0xb7   :  { %v1602_v49 = vadd.f32 %v1553_v9, %v616_v21  ;;  %v1605_v23 = vadd.f32 %v1555_v10, %v617_v40  ;;  %v1608_v59 = vadd.f32 %v1557_v11, %v618_v61  ;;  %v1611_v63 = vadd.f32 %v1559_v14, %v619_v58  ;;  %v734_v10 = vpop.permute.xlu0 %733 }
  0xb8   :  { %v1614_v0 = vadd.f32 %v1561_v35, %v620_v45  ;;  %v1617_v1 = vadd.f32 %v1563_v22, %v621_v62  ;;  %v1620_v5 = vadd.f32 %v1565_v26, %v622_v41  ;;  %v1623_v9 = vadd.f32 %v1567_v28, %v623_v44 }
  0xb9   :  { %v739_v11 = vrot.slane %v1602_v49, %v1308_v24  ;;  %v743_v14 = vrot.slane %v1605_v23, %v1308_v24  ;;  %v747_v35 = vrot.slane %v1608_v59, %v1308_v24  ;;  %v751_v22 = vrot.slane %v1611_v63, %v1308_v24 }
  0xba   :  { %v755_v26 = vrot.slane %v1614_v0, %v1308_v24  ;;  %v759_v28 = vrot.slane %v1617_v1, %v1308_v24  ;;  %v763_v6 = vrot.slane %v1620_v5, %v1308_v24  ;;  %v767_v13 = vrot.slane %v1623_v9, %v1308_v24 }
  0xbb   :  { %v1641_v47 = vmul.f32 %v739_v11, %v734_v10  ;;  %v1643_v48 = vmul.f32 %v743_v14, %v734_v10  ;;  %v1645_v51 = vmul.f32 %v747_v35, %v734_v10  ;;  %v1647_v52 = vmul.f32 %v751_v22, %v734_v10  ;;  %v890_v16 = vpop.permute.xlu0 %889 }
  0xbc   :  { %v1649_v57 = vmul.f32 %v755_v26, %v734_v10  ;;  %v1651_v34 = vmul.f32 %v759_v28, %v734_v10  ;;  %v1653_v60 = vmul.f32 %v763_v6, %v734_v10  ;;  %v1655_v2 = vmul.f32 %v767_v13, %v734_v10 }
  0xbd   :  { %v895_v4 = vrot.slane %v1602_v49, %v1339_v32  ;;  %v899_v24 = vrot.slane %v1605_v23, %v1339_v32  ;;  %v903_v7 = vrot.slane %v1608_v59, %v1339_v32  ;;  %v907_v8 = vrot.slane %v1611_v63, %v1339_v32 }
  0xbe   :  { %v911_v43 = vrot.slane %v1614_v0, %v1339_v32  ;;  %v915_v29 = vrot.slane %v1617_v1, %v1339_v32  ;;  %v919_v50 = vrot.slane %v1620_v5, %v1339_v32  ;;  %v923_v53 = vrot.slane %v1623_v9, %v1339_v32 }
  0xbf   :  { %v1673_v54 = vmul.f32 %v895_v4, %v890_v16  ;;  %v1675_v30 = vmul.f32 %v899_v24, %v890_v16  ;;  %v1677_v3 = vmul.f32 %v903_v7, %v890_v16  ;;  %v1679_v33 = vmul.f32 %v907_v8, %v890_v16  ;;  %v1046_v28 = vpop.permute.xlu0 %1045 }
  0xc0   :  { %v1681_v55 = vmul.f32 %v911_v43, %v890_v16  ;;  %v1683_v56 = vmul.f32 %v915_v29, %v890_v16  ;;  %v1685_v36 = vmul.f32 %v919_v50, %v890_v16  ;;  %v1687_v12 = vmul.f32 %v923_v53, %v890_v16  ;;  %v678_v43 = vpop.permute.xlu1 %677 }
  0xc1   :  { %v687_v32 = vrot.slane %v1602_v49, %v1336_v31  ;;  %v691_v37 = vrot.slane %v1605_v23, %v1336_v31  ;;  %v695_v21 = vrot.slane %v1608_v59, %v1336_v31  ;;  %v699_v40 = vrot.slane %v1611_v63, %v1336_v31 }
  0xc2   :  { %v703_v61 = vrot.slane %v1614_v0, %v1336_v31  ;;  %v707_v58 = vrot.slane %v1617_v1, %v1336_v31  ;;  %v711_v45 = vrot.slane %v1620_v5, %v1336_v31  ;;  %v715_v62 = vrot.slane %v1623_v9, %v1336_v31 }
  0xc3   :  { %v716_v41 = vmul.f32 %v687_v32, %v682_v15  ;;  %v717_v44 = vmul.f32 %v691_v37, %v682_v15  ;;  %v718_v10 = vmul.f32 %v695_v21, %v682_v15  ;;  %v719_v11 = vmul.f32 %v699_v40, %v682_v15 }
  0xc4   :  { %v720_v14 = vmul.f32 %v703_v61, %v682_v15  ;;  %v721_v35 = vmul.f32 %v707_v58, %v682_v15  ;;  %v722_v22 = vmul.f32 %v711_v45, %v682_v15  ;;  %v723_v26 = vmul.f32 %v715_v62, %v682_v15 }
  0xc5   :  { %v1051_v6 = vrot.slane %v1602_v49, %v1442_v38  ;;  %v1055_v13 = vrot.slane %v1605_v23, %v1442_v38  ;;  %v1059_v4 = vrot.slane %v1608_v59, %v1442_v38  ;;  %v1063_v31 = vrot.slane %v1611_v63, %v1442_v38 }
  0xc6   :  { %v1067_v24 = vrot.slane %v1614_v0, %v1442_v38  ;;  %v1071_v7 = vrot.slane %v1617_v1, %v1442_v38  ;;  %v1075_v8 = vrot.slane %v1620_v5, %v1442_v38  ;;  %v1079_v16 = vrot.slane %v1623_v9, %v1442_v38 }
  0xc7   :  { %v1721_v29 = vmul.f32 %v1051_v6, %v1046_v28  ;;  %v1723_v50 = vmul.f32 %v1055_v13, %v1046_v28  ;;  %v1725_v53 = vmul.f32 %v1059_v4, %v1046_v28  ;;  %v1727_v15 = vmul.f32 %v1063_v31, %v1046_v28 }
  0xc8   :  { %v1729_v32 = vmul.f32 %v1067_v24, %v1046_v28  ;;  %v1731_v37 = vmul.f32 %v1071_v7, %v1046_v28  ;;  %v1733_v21 = vmul.f32 %v1075_v8, %v1046_v28  ;;  %v1735_v40 = vmul.f32 %v1079_v16, %v1046_v28 }
  0xc9   :  { %v724_v61 = vadd.f32 %v716_v41, %v678_v43  ;;  %v725_v58 = vadd.f32 %v717_v44, %v678_v43  ;;  %v726_v38 = vadd.f32 %v718_v10, %v678_v43  ;;  %v727_v45 = vadd.f32 %v719_v11, %v678_v43  ;;  %v786_v10 = vpop.permute.xlu1 %785 }
  0xca   :  { %v728_v62 = vadd.f32 %v720_v14, %v678_v43  ;;  %v729_v6 = vadd.f32 %v721_v35, %v678_v43  ;;  %v730_v13 = vadd.f32 %v722_v22, %v678_v43  ;;  %v731_v39 = vadd.f32 %v723_v26, %v678_v43 }
  0xcb   :  { %v776_v4 = vadd.f32 %v1641_v47, %v724_v61  ;;  %v777_v31 = vadd.f32 %v1643_v48, %v725_v58  ;;  %v778_v24 = vadd.f32 %v1645_v51, %v726_v38  ;;  %v779_v7 = vadd.f32 %v1647_v52, %v727_v45 }
  0xcc   :  { %v780_v8 = vadd.f32 %v1649_v57, %v728_v62  ;;  %v781_v28 = vadd.f32 %v1651_v34, %v729_v6  ;;  %v782_v41 = vadd.f32 %v1653_v60, %v730_v13  ;;  %v783_v44 = vadd.f32 %v1655_v2, %v731_v39 }
  0xcd   :  { %v791_v11 = vrot.slane %v1602_v49, %v1356_v42  ;;  %v795_v47 = vrot.slane %v1605_v23, %v1356_v42  ;;  %v799_v48 = vrot.slane %v1608_v59, %v1356_v42  ;;  %v803_v51 = vrot.slane %v1611_v63, %v1356_v42  ;;  %v838_v19 = vpop.permute.xlu1 %837 }
  0xce   :  { %v807_v52 = vrot.slane %v1614_v0, %v1356_v42  ;;  %v811_v57 = vrot.slane %v1617_v1, %v1356_v42  ;;  %v815_v39 = vrot.slane %v1620_v5, %v1356_v42  ;;  %v819_v34 = vrot.slane %v1623_v9, %v1356_v42 }
  0xcf   :  { %v820_v60 = vmul.f32 %v791_v11, %v786_v10  ;;  %v821_v2 = vmul.f32 %v795_v47, %v786_v10  ;;  %v822_v14 = vmul.f32 %v799_v48, %v786_v10  ;;  %v823_v35 = vmul.f32 %v803_v51, %v786_v10 }
  0xd0   :  { %v824_v22 = vmul.f32 %v807_v52, %v786_v10  ;;  %v825_v26 = vmul.f32 %v811_v57, %v786_v10  ;;  %v826_v16 = vmul.f32 %v815_v39, %v786_v10  ;;  %v827_v43 = vmul.f32 %v819_v34, %v786_v10 }
  0xd1   :  { %v828_v61 = vadd.f32 %v820_v60, %v776_v4  ;;  %v829_v58 = vadd.f32 %v821_v2, %v777_v31  ;;  %v830_v38 = vadd.f32 %v822_v14, %v778_v24  ;;  %v831_v45 = vadd.f32 %v823_v35, %v779_v7 }
  0xd2   :  { %v832_v62 = vadd.f32 %v824_v22, %v780_v8  ;;  %v833_v6 = vadd.f32 %v825_v26, %v781_v28  ;;  %v834_v13 = vadd.f32 %v826_v16, %v782_v41  ;;  %v835_v20 = vadd.f32 %v827_v43, %v783_v44  ;;  %v942_v16 = vpop.permute.xlu1 %941 }
  0xd3   :  { %v843_v42 = vrot.slane %v1602_v49, %v1433_v27  ;;  %v847_v11 = vrot.slane %v1605_v23, %v1433_v27  ;;  %v851_v47 = vrot.slane %v1608_v59, %v1433_v27  ;;  %v855_v4 = vrot.slane %v1611_v63, %v1433_v27 }
  0xd4   :  { %v859_v31 = vrot.slane %v1614_v0, %v1433_v27  ;;  %v863_v24 = vrot.slane %v1617_v1, %v1433_v27  ;;  %v867_v7 = vrot.slane %v1620_v5, %v1433_v27  ;;  %v871_v8 = vrot.slane %v1623_v9, %v1433_v27 }
  0xd5   :  { %v872_v28 = vmul.f32 %v843_v42, %v838_v19  ;;  %v873_v41 = vmul.f32 %v847_v11, %v838_v19  ;;  %v874_v44 = vmul.f32 %v851_v47, %v838_v19  ;;  %v875_v10 = vmul.f32 %v855_v4, %v838_v19 }
  0xd6   :  { %v876_v48 = vmul.f32 %v859_v31, %v838_v19  ;;  %v877_v51 = vmul.f32 %v863_v24, %v838_v19  ;;  %v878_v52 = vmul.f32 %v867_v7, %v838_v19  ;;  %v879_v57 = vmul.f32 %v871_v8, %v838_v19 }
  0xd7   :  { %v880_v39 = vadd.f32 %v872_v28, %v828_v61  ;;  %v881_v34 = vadd.f32 %v873_v41, %v829_v58  ;;  %v882_v60 = vadd.f32 %v874_v44, %v830_v38  ;;  %v883_v2 = vadd.f32 %v875_v10, %v831_v45 }
  0xd8   :  { %v884_v14 = vadd.f32 %v876_v48, %v832_v62  ;;  %v885_v35 = vadd.f32 %v877_v51, %v833_v6  ;;  %v886_v22 = vadd.f32 %v878_v52, %v834_v13  ;;  %v887_v26 = vadd.f32 %v879_v57, %v835_v20 }
  0xd9   :  { %v947_v27 = vrot.slane %v1602_v49, %v1311_v25  ;;  %v951_v43 = vrot.slane %v1605_v23, %v1311_v25  ;;  %v955_v42 = vrot.slane %v1608_v59, %v1311_v25  ;;  %v959_v19 = vrot.slane %v1611_v63, %v1311_v25 }
  0xda   :  { %v963_v61 = vrot.slane %v1614_v0, %v1311_v25  ;;  %v967_v58 = vrot.slane %v1617_v1, %v1311_v25  ;;  %v971_v20 = vrot.slane %v1620_v5, %v1311_v25  ;;  %v975_v38 = vrot.slane %v1623_v9, %v1311_v25 }
  0xdb   :  { %v976_v45 = vmul.f32 %v947_v27, %v942_v16  ;;  %v977_v62 = vmul.f32 %v951_v43, %v942_v16  ;;  %v978_v6 = vmul.f32 %v955_v42, %v942_v16  ;;  %v979_v13 = vmul.f32 %v959_v19, %v942_v16 }
  0xdc   :  { %v980_v11 = vmul.f32 %v963_v61, %v942_v16  ;;  %v981_v47 = vmul.f32 %v967_v58, %v942_v16  ;;  %v982_v4 = vmul.f32 %v971_v20, %v942_v16  ;;  %v983_v31 = vmul.f32 %v975_v38, %v942_v16  ;;  %v994_v16 = vpop.permute.xlu1 %993 }
  0xdd   :  { %v932_v24 = vadd.f32 %v1673_v54, %v880_v39  ;;  %v933_v7 = vadd.f32 %v1675_v30, %v881_v34  ;;  %v934_v8 = vadd.f32 %v1677_v3, %v882_v60  ;;  %v935_v28 = vadd.f32 %v1679_v33, %v883_v2 }
  0xde   :  { %v936_v41 = vadd.f32 %v1681_v55, %v884_v14  ;;  %v937_v25 = vadd.f32 %v1683_v56, %v885_v35  ;;  %v938_v44 = vadd.f32 %v1685_v36, %v886_v22  ;;  %v939_v10 = vadd.f32 %v1687_v12, %v887_v26 }
  0xdf   :  { %v984_v48 = vadd.f32 %v976_v45, %v932_v24  ;;  %v985_v51 = vadd.f32 %v977_v62, %v933_v7  ;;  %v986_v52 = vadd.f32 %v978_v6, %v934_v8  ;;  %v987_v57 = vadd.f32 %v979_v13, %v935_v28 }
  0xe0   :  { %v988_v54 = vadd.f32 %v980_v11, %v936_v41  ;;  %v989_v39 = vadd.f32 %v981_v47, %v937_v25  ;;  %v990_v30 = vadd.f32 %v982_v4, %v938_v44  ;;  %v991_v34 = vadd.f32 %v983_v31, %v939_v10  ;;  %v1877_v47 = vld [vmem:[#allocation4_spill] sm:$0xff]  ;;  %v1879_v4 = vld [vmem:[#allocation5_spill] sm:$0xff] }
  0xe1   :  { %v999_v3 = vrot.slane %v1602_v49, %v1364_v46  ;;  %v1003_v33 = vrot.slane %v1605_v23, %v1364_v46  ;;  %v1007_v55 = vrot.slane %v1608_v59, %v1364_v46  ;;  %v1011_v56 = vrot.slane %v1611_v63, %v1364_v46 }
  0xe2   :  { %v1015_v36 = vrot.slane %v1614_v0, %v1364_v46  ;;  %v1019_v12 = vrot.slane %v1617_v1, %v1364_v46  ;;  %v1023_v60 = vrot.slane %v1620_v5, %v1364_v46  ;;  %v1027_v49 = vrot.slane %v1623_v9, %v1364_v46 }
  0xe3   :  { %v1028_v2 = vmul.f32 %v999_v3, %v994_v16  ;;  %v1029_v23 = vmul.f32 %v1003_v33, %v994_v16  ;;  %v1030_v14 = vmul.f32 %v1007_v55, %v994_v16  ;;  %v1031_v35 = vmul.f32 %v1011_v56, %v994_v16 }
  0xe4   :  { %v1032_v59 = vmul.f32 %v1015_v36, %v994_v16  ;;  %v1033_v22 = vmul.f32 %v1019_v12, %v994_v16  ;;  %v1034_v26 = vmul.f32 %v1023_v60, %v994_v16  ;;  %v1035_v63 = vmul.f32 %v1027_v49, %v994_v16  ;;  %v1882_v16 = vld [vmem:[#allocation3_spill] sm:$0xff] }
  0xe5   :  { %v1036_v27 = vadd.f32 %v1028_v2, %v984_v48  ;;  %v1037_v43 = vadd.f32 %v1029_v23, %v985_v51  ;;  %v1038_v0 = vadd.f32 %v1030_v14, %v986_v52  ;;  %v1039_v42 = vadd.f32 %v1031_v35, %v987_v57 }
  0xe6   :  { %v1040_v19 = vadd.f32 %v1032_v59, %v988_v54  ;;  %v1041_v1 = vadd.f32 %v1033_v22, %v989_v39  ;;  %v1042_v61 = vadd.f32 %v1034_v26, %v990_v30  ;;  %v1043_v58 = vadd.f32 %v1035_v63, %v991_v34 }
  0xe7   :  { %v1088_v5 = vadd.f32 %v1721_v29, %v1036_v27  ;;  %v1089_v46 = vadd.f32 %v1723_v50, %v1037_v43  ;;  %v1090_v9 = vadd.f32 %v1725_v53, %v1038_v0  ;;  %v1091_v20 = vadd.f32 %v1727_v15, %v1039_v42 }
  0xe8   :  { %v1092_v38 = vadd.f32 %v1729_v32, %v1040_v19  ;;  %v1093_v45 = vadd.f32 %v1731_v37, %v1041_v1  ;;  %v1094_v62 = vadd.f32 %v1733_v21, %v1042_v61  ;;  %v1095_v6 = vadd.f32 %v1735_v40, %v1043_v58 }
  0xe9   :  { %v1142_v13 = vadd.f32 %v1418_v17, %v1088_v5  ;;  %v1875_v11 = vcombine.high %v1418_v17, %v1418_v17  ;;  %v1144_v50 = vadd.f32 %v1421_v18, %v1090_v9  ;;  %v1876_v53 = vcombine.high %v1421_v18, %v1421_v18  ;;  %v1881_v17 = vld [vmem:[#allocation6_spill] sm:$0xff] }
  0xea   :  { %v1146_v32 = vadd.f32 %v1877_v47, %v1092_v38  ;;  %v1878_v37 = vcombine.high %v1877_v47, %v1877_v47  ;;  %v1148_v40 = vadd.f32 %v1879_v4, %v1094_v62  ;;  %v1880_v31 = vcombine.high %v1879_v4, %v1879_v4 }
  0xeb   :  { %v1143_v29 = vadd.f32 %v1875_v11, %v1089_v46  ;;  %v1145_v15 = vadd.f32 %v1876_v53, %v1091_v20  ;;  %v1152_v7 = vadd.f32 %v1881_v17, %v1142_v13  ;;  %v1154_v28 = vadd.f32 %v1881_v17, %v1144_v50 }
  0xec   :  { %v1147_v21 = vadd.f32 %v1878_v37, %v1093_v45  ;;  %v1149_v24 = vadd.f32 %v1880_v31, %v1095_v6  ;;  %v1156_v41 = vadd.f32 %v1881_v17, %v1146_v32  ;;  %v1158_v44 = vadd.f32 %v1881_v17, %v1148_v40 }
  0xed   :  { %v1153_v8 = vadd.f32 %v1881_v17, %v1143_v29  ;;  %v1155_v18 = vadd.f32 %v1881_v17, %v1145_v15 }
  0xee   :  { %v1157_v25 = vadd.f32 %v1881_v17, %v1147_v21  ;;  %v1159_v10 = vadd.f32 %v1881_v17, %v1149_v24 }
  0xef   :  { %v1168_v48 = vcombine.low %v1152_v7, %v1153_v8  ;;  %v1169_v51 = vcombine.low %v1154_v28, %v1155_v18 }
  0xf0   :  { %v1185_v52 = vcombine.low %v1156_v41, %v1157_v25  ;;  %v1186_v57 = vcombine.low %v1158_v44, %v1159_v10 }
  0xf1   :  { %v1176_v54 = vrot.slane %v1168_v48, %v1882_v16  ;;  %v1183_v39 = vrot.slane %v1169_v51, %v1882_v16 }
  0xf2   :  { %v1193_v30 = vrot.slane %v1185_v52, %v1882_v16  ;;  %v1200_v34 = vrot.slane %v1186_v57, %v1882_v16 }
  0xf3   :  { %v1184_v3 = vcombine.low %v1176_v54, %v1183_v39 }
  0xf4   :  { %v1201_v33 = vcombine.low %v1193_v30, %v1200_v34 }
  0xf5   :  { %1204 = vst [vmem:[%s1863_s4] sm:$0xff] %v1184_v3 }
  0xf6   :  { %1205 = vst [vmem:[%s1863_s4 + $0x8] sm:$0xff] %v1201_v33 }

</bundles_post_ra>
